<compile_context>
chip_gen: v7x
topology: tpu7x:2x2x1
jax: 0.10.0
libtpu: 0.0.40
codegen_flags: <defaults>
</compile_context>

<pallas_src>
import math
import jax
import jax.numpy as jnp
from jax.experimental import pallas as pl
from jax.experimental.pallas import tpu as pltpu


_MIB = 1024 * 1024
_MIN_PALLAS_ELEMENTS = 1 << 20      # below ~1M elems a fused XLA add beats kernel launch cost
_PE_RESIDENT_MAX_BYTES = 4 * _MIB   # keep the whole pe slab resident in VMEM if it's this small


def _make_positional_encoding(hidden_size: int, max_seq_len: int) -> jnp.ndarray:
    """Deterministic sinusoidal table, identical to the PyTorch __init__."""
    position = jnp.arange(0, max_seq_len, dtype=jnp.float32)[:, None]            # (L, 1)
    div_term = jnp.exp(
        jnp.arange(0, hidden_size, 2, dtype=jnp.float32)
        * (-math.log(10000.0) / hidden_size)
    )                                                                             # (H/2,)
    angles = position * div_term                                                  # (L, H/2)
    pe = jnp.zeros((max_seq_len, hidden_size), dtype=jnp.float32)
    pe = pe.at[:, 0::2].set(jnp.sin(angles))
    pe = pe.at[:, 1::2].set(jnp.cos(angles))
    return pe                                                                     # (L, H)


def _physical_vmem_bytes() -> int:
    """Best-effort physical VMEM query; conservative 64 MiB (v7x per-TC) fallback."""
    try:
        info = pltpu.get_tpu_info()
        for attr in ("vmem_capacity_bytes", "vmem_bytes", "vmem_size_bytes"):
            v = getattr(info, attr, None)
            if v:
                return int(v)
    except Exception:
        pass
    return 64 * _MIB


def _sublane_multiple(itemsize: int) -> int:
    # Sub-32-bit dtypes pack along sublanes: bf16 rows travel in pairs, int8/fp8 in quads.
    return {4: 8, 2: 16, 1: 32}.get(itemsize, 8)


def _pick_row_tile(num_rows: int, row_bytes: int, mult: int, target_bytes: int) -> int:
    """Largest row tile (multiple of `mult`, or the full extent) with <= target_bytes per block."""
    max_rows = max(1, target_bytes // max(1, row_bytes))
    if num_rows <= max_rows:
        return num_rows                              # full extent: always a legal block
    return max(mult, (max_rows // mult) * mult)


def _ensure_min_parallel_steps(num_rows: int, batch: int, t_rows: int, mult: int,
                               min_steps: int = 2) -> int:
    """Shrink the row tile (keeping the sublane multiple) until the parallel grid has
    at least `min_steps` steps, so v7x's two TensorCores both get work."""
    def steps(t):
        return -(-num_rows // t) * batch
    while steps(t_rows) < min_steps and t_rows > mult:
        half = -(-t_rows // 2)
        half = max(mult, (half // mult) * mult)
        if half >= t_rows:
            break
        t_rows = half
    return t_rows


def _add_pe_blocked_kernel(x_ref, pe_ref, o_ref):
    # Pure VPU elementwise add on identically-shaped lane-dense tiles.
    o_ref[...] = x_ref[...] + pe_ref[...]


def _add_pe_resident_kernel(x_ref, pe_ref, o_ref):
    # pe_ref holds the full (padded) pe slab resident in VMEM; slice the row block.
    r = pl.program_id(0)
    t_rows = x_ref.shape[0]
    o_ref[...] = x_ref[...] + pe_ref[pl.ds(r * t_rows, t_rows), :]


def positional_encoding_forward(x: jnp.ndarray, pos_enc: jnp.ndarray,
                                *, force_pallas: bool = False,
                                alias_input: bool = False) -> jnp.ndarray:
    """out = x + pos_enc[:S][None];  x: (B, S, H), pos_enc: (max_seq_len, H)."""
    B, S, H = x.shape
    # NOTE: pe is rounded to x.dtype before the add (matches an all-x.dtype PyTorch run;
    # differs at the last bit from an f32-accumulate-then-cast reference for bf16 x).
    pe = pos_enc[:S, :].astype(x.dtype)                                           # (S, H)

    # Tiny activations: the pallas_call fixed cost dwarfs a fused XLA add.
    if not force_pallas and B * S * H < _MIN_PALLAS_ELEMENTS:
        return x + pe[None, :, :]

    itemsize = jnp.dtype(x.dtype).itemsize

    # Lane-dense 2D layout of the per-batch (S, H) slab.
    if (S * H) % 128 == 0:
        C = 128                       # preferred: full 128-lane unmasked stores
    else:
        C = H                         # fallback: last dim equals full extent (legal, lane-masked)
    R = (S * H) // C

    x3 = x.reshape(B, R, C)           # contiguous reshape, free
    pe2 = pe.reshape(R, C)

    mult = _sublane_multiple(itemsize)
    phys_vmem = _physical_vmem_bytes()
    # Higher-BW chips want bigger tiles to amortize the ~0.35 us per-step fixed cost.
    target_bytes = 6 * _MIB if phys_vmem <= 64 * _MIB else 4 * _MIB
    row_bytes = C * itemsize
    tR = _pick_row_tile(R, row_bytes, mult, target_bytes)
    tR = _ensure_min_parallel_steps(R, B, tR, mult, min_steps=2)

    n_row_blocks = pl.cdiv(R, tR)     # ragged last block is masked by Pallas
    grid = (n_row_blocks, B)

    pe_bytes = R * C * itemsize
    pe_resident = pe_bytes <= _PE_RESIDENT_MAX_BYTES
    tile_bytes = tR * C * itemsize

    if pe_resident:
        # Pad pe rows so the in-kernel pl.ds slice never reads OOB on the ragged tail.
        R_pad = n_row_blocks * tR
        if R_pad != R:
            pe2 = jnp.pad(pe2, ((0, R_pad - R), (0, 0)))
        kernel = _add_pe_resident_kernel
        # Constant block index across the whole grid -> single DMA, stays resident.
        pe_spec = pl.BlockSpec((pe2.shape[0], C), lambda r, b: (0, 0))
        vmem_needed = 4 * tile_bytes + pe2.shape[0] * C * itemsize
    else:
        kernel = _add_pe_blocked_kernel
        pe_spec = pl.BlockSpec((tR, C), lambda r, b: (r, 0))
        vmem_needed = 6 * tile_bytes

    # Explicit scoped-VMEM limit: defaults (16/32/32 MiB on v5e/v6e/v7x) would gate
    # 4-6 MiB double-buffered tiles; keep headroom under physical VMEM.
    vmem_limit = int(min(phys_vmem * 3 // 4, 64 * _MIB))
    vmem_limit = max(vmem_limit, int(vmem_needed) + 4 * _MIB)

    cost = pl.CostEstimate(
        flops=B * S * H,
        transcendentals=0,
        bytes_accessed=2 * B * S * H * itemsize + S * H * itemsize,
    )

    # input_output_aliases={0: 0} is only beneficial when x is donated under jit;
    # eagerly it forces a defensive copy, so it is opt-in via alias_input.
    out3 = pl.pallas_call(
        kernel,
        out_shape=jax.ShapeDtypeStruct((B, R, C), x.dtype),
        grid_spec=pltpu.PrefetchScalarGridSpec(
            num_scalar_prefetch=0,
            grid=grid,
            in_specs=[
                pl.BlockSpec((None, tR, C), lambda r, b: (b, r, 0)),   # x tile (tR, C)
                pe_spec,                                               # pe tile / resident slab
            ],
            out_specs=pl.BlockSpec((None, tR, C), lambda r, b: (b, r, 0)),
        ),
        compiler_params=pltpu.CompilerParams(
            dimension_semantics=("parallel", "parallel"),
            vmem_limit_bytes=vmem_limit,
        ),
        cost_estimate=cost,
        input_output_aliases=({0: 0} if alias_input else {}),
    )(x3, pe2)

    return out3.reshape(B, S, H)


if __name__ == "__main__":
    MAX_SEQ_LEN = 120
    H = 32
    key = jax.random.PRNGKey(0)
    pos_enc = _make_positional_encoding(H, MAX_SEQ_LEN)                           # (120, 32)

    # Case 1: small shapes consistent with the module: batch=2, seq=8, hidden=32.
    B, S = 2, 8
    x = jax.random.normal(key, (B, S, H), dtype=jnp.float32)
    out = positional_encoding_forward(x, pos_enc, force_pallas=True)
    out = jax.block_until_ready(out)
    ref = x + pos_enc[None, :S, :]
    assert out.shape == (B, S, H)
    assert jnp.allclose(out, ref, atol=1e-6), "mismatch vs reference (case 1)"

    # Case 2: full max_seq_len window, still small.
    B2, S2 = 2, MAX_SEQ_LEN
    x2 = jax.random.normal(jax.random.PRNGKey(1), (B2, S2, H), dtype=jnp.float32)
    out2 = positional_encoding_forward(x2, pos_enc, force_pallas=True)
    out2 = jax.block_until_ready(out2)
    ref2 = x2 + pos_enc[None, :S2, :]
    assert jnp.allclose(out2, ref2, atol=1e-6), "mismatch vs reference (case 2)"

    print("KERNEL_OK")
</pallas_src>

<mosaic_0001>
module attributes {stable_mosaic.version = 11 : i64} {
  func.func @_add_pe_resident_kernel(%arg0: i32, %arg1: i32, %arg2: memref<1x2x128xf32, #tpu.memory_space<vmem>>, %arg3: memref<2x128xf32, #tpu.memory_space<vmem>>, %arg4: memref<1x2x128xf32, #tpu.memory_space<vmem>>) attributes {dimension_semantics = [#tpu.dimension_semantics<parallel>, #tpu.dimension_semantics<parallel>], iteration_bounds = array<i64: 1, 2>, scalar_prefetch = 0 : i64, scratch_operands = 0 : i64, tpu.core_type = #tpu.core_type<tc>, window_params = [{transform_indices = @transform_0, window_bounds = array<i64: 1, 2, 128>}, {pipeline_mode = #tpu.pipeline_mode<synchronous>, transform_indices = @transform_1, window_bounds = array<i64: 2, 128>}, {transform_indices = @transform_2, window_bounds = array<i64: 1, 2, 128>}]} {
    %c0 = arith.constant 0 : index
    %c0_0 = arith.constant 0 : index
    %c0_1 = arith.constant 0 : index
    %0 = vector.load %arg2[%c0, %c0_0, %c0_1] : memref<1x2x128xf32, #tpu.memory_space<vmem>>, vector<1x2x128xf32>
    %1 = vector.shape_cast %0 : vector<1x2x128xf32> to vector<2x128xf32>
    %c2_i32 = arith.constant 2 : i32
    %2 = arith.muli %arg0, %c2_i32 : i32
    %3 = arith.index_cast %2 : i32 to index
    %c0_2 = arith.constant 0 : index
    %4 = vector.load %arg3[%3, %c0_2] : memref<2x128xf32, #tpu.memory_space<vmem>>, vector<2x128xf32>
    %5 = arith.addf %1, %4 : vector<2x128xf32>
    %c0_3 = arith.constant 0 : index
    %c0_4 = arith.constant 0 : index
    %c0_5 = arith.constant 0 : index
    %6 = vector.load %arg4[%c0_3, %c0_4, %c0_5] : memref<1x2x128xf32, #tpu.memory_space<vmem>>, vector<1x2x128xf32>
    %7 = vector.shape_cast %6 : vector<1x2x128xf32> to vector<2x128xf32>
    %8 = vector.shape_cast %5 : vector<2x128xf32> to vector<1x2x128xf32>
    tpu.vector_store %arg4[%c0_3, %c0_4, %c0_5], %8 {strides = array<i32>} : memref<1x2x128xf32, #tpu.memory_space<vmem>>, vector<1x2x128xf32>,
    return
  }
  func.func @transform_0(%arg0: i32, %arg1: i32) -> (i32, i32, i32) {
    %c0_i32 = arith.constant 0 : i32
    %c0_i32_0 = arith.constant 0 : i32
    return %arg1, %arg0, %c0_i32 : i32, i32, i32
  }
  func.func @transform_1(%arg0: i32, %arg1: i32) -> (i32, i32) {
    %c0_i32 = arith.constant 0 : i32
    %c0_i32_0 = arith.constant 0 : i32
    %c0_i32_1 = arith.constant 0 : i32
    return %c0_i32, %c0_i32_0 : i32, i32
  }
  func.func @transform_2(%arg0: i32, %arg1: i32) -> (i32, i32, i32) {
    %c0_i32 = arith.constant 0 : i32
    %c0_i32_0 = arith.constant 0 : i32
    return %arg1, %arg0, %c0_i32 : i32, i32, i32
  }
}

</mosaic_0001>

<bundles_post_ra>
// kernel: tpu_custom_call.1
= control target key start
LH: loop header
LB: loop body
LE: loop exit
PB: predicated region body
PF: predicated region fallthrough
CT: control target
= control target key end

     0   :  { %7 = vsyncpa [#allocation3], 0  ;;  %s660_s0 = inlined_call_operand.hbm [shape: f32[2,2,128], index: 0, kind: input, shape index: {}]   ;;  %s661_s1 = inlined_call_operand.vmem [shape: f32[2,128], index: 1, kind: input, shape index: {}]   ;;  %s662_s2 = inlined_call_operand.hbm [shape: f32[2,2,128], index: 2, kind: output, shape index: {}]  }
   0x1   :  { %9 = vsyncpa [#allocation3 + $0x1], 0 }
   0x2   :  { %10 = vsyncpa [#allocation4], 0 }
   0x3   :  { %12 = vsyncpa [#allocation4 + $0x1], 0  ;;  %s485_s9 = smov 0   ;;  %s487_s10 = smov 0  }
   0x4   :  { %s489_s11 = smov 0   ;;  %s491_s12 = smov 0  }
   0x5   :  { %s493_s13 = smov 0   ;;  %s495_s14 = smov 0  }
   0x6 LB: > { %s279_s15 = sadd.s32 4294967295, %s466_s14   ;;  %s280_s16 = sadd.s32 4294967294, %s466_s14   ;;  %s466_s14 = sphi %s495_s14, %s18_s14   ;;  %s462_s13 = sphi %s493_s13, %s678_s13   ;;  %s458_s12 = sphi %s491_s12, %s677_s12   ;;  %s454_s11 = sphi %s489_s11, %s676_s11   ;;  %s450_s10 = sphi %s487_s10, %s675_s10   ;;  %s446_s9 = sphi %s485_s9, %s674_s9  }
   0x7   : > { %s27_s17 = sadd.s32 1, %s462_s13  ;;  %s39_s18 = sadd.s32 1, %s454_s11 }
   0x8   : > { %p28_p0 = scmp.ge.s32.totalorder %s27_s17, 2  ;;  %p46_p1 = scmp.ne.s32.totalorder %s454_s11, %s450_s10 }
   0x9   : > { %p47_p2 = scmp.eq.s32.totalorder %s466_s14, 0  ;;  %p52_p3 = scmp.ne.s32.totalorder %s450_s10, %s446_s9 }
   0xa   : > { %s680_s17 = smov (%p28_p0, %s27_s17), 0  ;;  %p53_p5 = scmp.eq.s32.totalorder %s279_s15, 0 }
   0xb   : > { %p526_p4 = por %p47_p2, %p46_p1  ;;  %s34_s20 = ssub.s32 %s462_s13, %s680_s17 }
   0xc   : > { %p99_p6 = scmp.eq.s32.totalorder %s279_s15, 1  ;;  %p37_p7 = scmp.eq.s32.totalorder %s34_s20, 0 }
   0xd   : > { %p532_p8 = por %p53_p5, %p52_p3  ;;  %p105_p10 = scmp.eq.s32.totalorder %s280_s16, 1 }
   0xe   : > { %p536_p9 = por %p99_p6, %p46_p1  ;;  %p304_p13 = scmp.lt.s32.totalorder %s466_s14, 2 }
   0xf   : > { %s541_s23 = scalar_select %p37_p7, %s454_s11, %s39_s18  }
  0x10   : > { %s666_s22 = scalar_select %p536_p9, 1, 0 }
  0x11   : > { %p543_p11 = por %p105_p10, %p52_p3  ;;  %s128_s25 = sand.u32 1, %s454_s11  }
  0x12   : > { %s283_s26 = sshll.u32 %s128_s25, 1  ;;  %s284_s27 = sshll.u32 %s462_s13, 5 }
  0x13   : > { %s667_s24 = scalar_select %p543_p11, 1, 0 }
  0x14   : > { %s554_s30 = scalar_lea.hbm %s660_s0, %s284_s27  ;;  %s132_s3 = scalar_lea.vmem [#allocation2], %s283_s26 }
  0x15   : > { %s140_s4 = sshll.u32 %s132_s3, 4  ;;  %p560_p0 = pnand %p304_p13, %p526_p4  ;;  %s556_s4 = int_to_ptr.vmem [resolvable:$true] %s140_s4 }
  0x16   : > { %s129_s6 = scalar_lea.sflag [#allocation3], %s128_s25  ;;  %s354_s7 = scalar_lea.hbm %s554_s30, 32 }
  0x17   : > { %p355_p3 = scmp.ne.s32.totalorder %s554_s30, %s354_s7  ;;  %p356_p5 = pneg %p560_p0 }
  0x18   : > { %s359_s16 = scalar_lea.hbm %s660_s0, 64  ;;  %p360_p4 = scmp.lt.u32.totalorder %s554_s30, %s660_s0 }
  0x19   : > { %p357_p6 = pnand %p356_p5, %p355_p3  ;;  %p361_p10 = scmp.lt.u32.totalorder %s359_s16, %s354_s7 }
  0x1a   : > { %p363_p12 = scmp.lt.u32.totalorder %s354_s7, %s554_s30 }
  0x1b   : > { %p358_p7 = pneg %p357_p6  ;;  %p362_p13 = por %p361_p10, %p360_p4 }
  0x1d   : > { %p364_p1 = por %p363_p12, %p362_p13 }
  0x1f   : > { %p365_p2 = pnand %p364_p1, %p358_p7 }
  0x21   : > { %368 = shalt.err (!%p365_p2)
}
  0x22   : > { %s369_s20 = scalar_lea.vmem %s556_s4, 32  ;;  %s468_s25 = smov [#allocation2]  }
  0x23   : > { %p370_p3 = scmp.ne.s32.totalorder %s556_s4, %s369_s20  ;;  %s374_s26 = sshll.u32 %s468_s25, 4  ;;  %s375_s26 = int_to_ptr.vmem [resolvable:$false] %s374_s26 }
  0x24   : > { %s376_s27 = scalar_lea.vmem %s375_s26, 64  ;;  %p377_p9 = scmp.lt.s32.totalorder %s556_s4, %s375_s26 }
  0x25   : > { %p372_p6 = pnand %p370_p3, %p356_p5  ;;  %p378_p4 = scmp.lt.s32.totalorder %s376_s27, %s369_s20 }
  0x27   : > { %p373_p11 = pneg %p372_p6  ;;  %p379_p10 = por %p378_p4, %p377_p9 }
  0x29   : > { %p380_p12 = pnand %p379_p10, %p373_p11 }
  0x2b   : > { %383 = shalt.err (!%p380_p12)
}
  0x2c   : > { %299 = dma.hbm_to_vmem [thread:$0]  (!%p560_p0), %s554_s30, 32, %s556_s4, %s129_s6  }
  0x2d   : > { %p669_p1 = scmp.lt.s32.totalorder %s466_s14, 3  ;;  %p670_p2 = scmp.ge.s32.totalorder %s466_s14, 1 }
  0x2f   : > { %p146_p5 = pnand %p670_p2, %p669_p1 }
  0x30   : > { %s596_s28 = sand.u32 (!%p146_p5), 1, %s450_s10  }
  0x31   : > { %149 = sbr.rel (%p146_p5) target bundleno = 83 (0x53), region = 28  ;;  %s286_s29 = sshll.u32 (!%p146_p5), %s596_s28, 1 }
  0x32   : > { %s152_s3 = scalar_lea.sflag (!%p146_p5), [#allocation3], %s596_s28  ;;  %s155_s7 = scalar_lea.vmem (!%p146_p5), [#allocation2], %s286_s29 }
  0x38   : > { %437 = dma.done.wait (%p532_p8), %s152_s3, 32  }
  0x39   : > { %439 = vsyncadd (%p532_p8), %s152_s3, 4294967264  ;;  %s175_s30 = scalar_lea.vmem [#allocation5], %s286_s29  ;;  %s289_s5 = sshll.u32 %s458_s12, 5  ;;  %v176_v0 = vld [vmem:[%s155_s7] sm:$0x3] }
  0x3a   : > { %s197_s4 = sshll.u32 %s175_s30, 4  ;;  %v179_v1 = vld [vmem:[%s661_s1] sm:$0x3]  ;;  %s613_s21 = scalar_lea.hbm %s662_s2, %s289_s5  ;;  %s608_s4 = int_to_ptr.vmem [resolvable:$true] %s197_s4 }
  0x3b   : > { %v180_v2 = vadd.f32 %v179_v1, %v176_v0  ;;  %s183_s18 = scalar_lea.sflag [#allocation4], %s596_s28  ;;  %s384_s19 = scalar_lea.vmem %s608_s4, 32 }
  0x3c   : > { %p385_p8 = scmp.ne.s32.totalorder %s608_s4, %s384_s19  ;;  %p671_p9 = scmp.ne.s32.totalorder %s666_s22, 0 }
  0x3d   : > { %181 = vst [vmem:[%s175_s30] sm:$0x3] %v180_v2  ;;  %s469_s12 = smov [#allocation5]  }
  0x3e   : > { %p386_p11 = pnand %p385_p8, %p671_p9  ;;  %s388_s20 = sshll.u32 %s469_s12, 4  ;;  %s389_s20 = int_to_ptr.vmem [resolvable:$false] %s388_s20 }
  0x3f   : > { %s390_s25 = scalar_lea.vmem %s389_s20, 64  ;;  %p391_p7 = scmp.lt.s32.totalorder %s608_s4, %s389_s20 }
  0x40   : > { %p387_p0 = pneg %p386_p11  ;;  %p392_p13 = scmp.lt.s32.totalorder %s390_s25, %s384_s19 }
  0x42   : > { %p393_p3 = por %p392_p13, %p391_p7 }
  0x44   : > { %p394_p6 = pnand %p393_p3, %p387_p0 }
  0x46   : > { %397 = shalt.err (!%p394_p6)
}
  0x47   : > { %s398_s26 = scalar_lea.hbm %s613_s21, 32  ;;  %s402_s29 = scalar_lea.hbm %s662_s2, 64 }
  0x48   : > { %p399_p4 = scmp.ne.s32.totalorder %s613_s21, %s398_s26  ;;  %p403_p1 = scmp.lt.u32.totalorder %s613_s21, %s662_s2 }
  0x49   : > { %p404_p2 = scmp.lt.u32.totalorder %s402_s29, %s398_s26  ;;  %p406_p8 = scmp.lt.u32.totalorder %s398_s26, %s613_s21 }
  0x4a   : > { %p400_p10 = pnand %p399_p4, %p671_p9 }
  0x4b   : > { %p405_p5 = por %p404_p2, %p403_p1 }
  0x4c   : > { %p401_p12 = pneg %p400_p10 }
  0x4d   : > { %p407_p11 = por %p406_p8, %p405_p5 }
  0x4f   : > { %p408_p0 = pnand %p407_p11, %p401_p12 }
  0x51   : > { %411 = shalt.err (!%p408_p0)
}
  0x52   : > { %294 = dma.vmem_to_hbm [thread:$0]  (%p671_p9), %s608_s4, 32, %s613_s21, %s183_s18  }
  0x53 PF: > { %s209_s30 = sand.u32 1, %s446_s9   ;;  %p672_p7 = scmp.ne.s32.totalorder %s667_s24, 0 }
  0x54   : > { %p673_p13 = scmp.ge.s32.totalorder %s466_s14, 2  ;;  %s210_s5 = scalar_lea.sflag [#allocation4], %s209_s30 }
  0x56   : > { %p301_p3 = pnand %p673_p13, %p672_p7 }
  0x58   : > { %441 = dma.done.wait (!%p301_p3), %s210_s5, 32  }
  0x59   : > { %443 = vsyncadd (!%p301_p3), %s210_s5, 4294967264  ;;  %s18_s14 = sadd.s32 1, %s466_s14   ;;  %s674_s9 = smov %s450_s10 }
  0x5a   : > { %p15_p6 = scmp.ge.s32.totalorder %s18_s14, 4   ;;  %s675_s10 = smov %s454_s11 }
  0x5b   : > { %s676_s11 = smov %s541_s23  ;;  %s677_s12 = smov %s462_s13 }
  0x5c   : > { %s678_s13 = smov %s680_s17  ;;  %17 = sbr.rel (!%p15_p6) target bundleno = 6 (0x6), region = 74 }
  0x63   :  { %215 = vsyncpa [#allocation3], 1 }
  0x64   :  { %217 = vsyncpa [#allocation3 + $0x1], 1 }
  0x65   :  { %218 = vsyncpa [#allocation4], 1 }
  0x66   :  { %220 = vsyncpa [#allocation4 + $0x1], 1 }

</bundles_post_ra>
